<compile_context>
chip_gen: v5e
topology: v5e:2x2
jax: 0.10.0
libtpu: 0.0.40
codegen_flags: <defaults>
</compile_context>

<pallas_src>
import functools
import math

import jax
import jax.numpy as jnp
from jax.experimental import pallas as pl
from jax.experimental.pallas import tpu as pltpu


def _round_up(x, m):
    return ((x + m - 1) // m) * m


# ----------------------------- Pallas kernel ---------------------------------

def decoder_kernel(ids_ref, tbl_ref, ctx_ref, h0_ref,
                   w0e_ref, w0c_ref, w0h_ref, b0_ref,
                   w1x_ref, w1h_ref, b1_ref,
                   woe_ref, woh_ref, woc_ref, bout_ref,
                   pred_ref, hnew_ref, *, hid):
    H = hid
    f32 = jnp.float32
    bf16 = jnp.bfloat16

    # --- embedding gather inside the kernel: one-hot(ids) @ table (one MXU push).
    # TODO(synk): for large vocabularies keep the table in HBM (memory_space=pl.ANY)
    # and DMA only the B needed rows (scalar-prefetched ids); at V=50 the whole
    # table is ~7 KiB so the in-VMEM one-hot matmul is the cheaper option.
    ids = ids_ref[...]                                            # (B, 1) int32
    B = ids.shape[0]
    Vp = tbl_ref.shape[0]
    onehot = (jax.lax.broadcasted_iota(jnp.int32, (B, Vp), 1) == ids).astype(f32)
    emb = jnp.dot(onehot, tbl_ref[...], preferred_element_type=f32)   # (B, E) f32

    h_l0 = h0_ref[0]                                              # (B, H) f32
    h_l1 = h0_ref[1]                                              # (B, H) f32
    ctx0 = ctx_ref[0]                                             # (B, H) f32
    ctx1 = ctx_ref[1]

    emb_b = emb.astype(bf16)

    # --- layer-0 input-side gate pre-activations, hoisted out of the time loop
    #     (emb term is identical for both steps; both context steps done up front).
    gi_emb = jnp.dot(emb_b, w0e_ref[...], preferred_element_type=f32)     # (B, 3H)
    gi_ctx = (jnp.dot(ctx0.astype(bf16), w0c_ref[...], preferred_element_type=f32),
              jnp.dot(ctx1.astype(bf16), w0c_ref[...], preferred_element_type=f32))

    # --- biases (layout per layer: [r_sum | z_sum | n_ih | n_hh]), broadcast once.
    b0 = b0_ref[...]                                              # (1, 4H)
    b1 = b1_ref[...]                                              # (1, 4H)
    b0_r = jnp.broadcast_to(b0[:, 0:H], (B, H))
    b0_z = jnp.broadcast_to(b0[:, H:2 * H], (B, H))
    b0_in = jnp.broadcast_to(b0[:, 2 * H:3 * H], (B, H))
    b0_hn = jnp.broadcast_to(b0[:, 3 * H:4 * H], (B, H))
    b1_r = jnp.broadcast_to(b1[:, 0:H], (B, H))
    b1_z = jnp.broadcast_to(b1[:, H:2 * H], (B, H))
    b1_in = jnp.broadcast_to(b1[:, 2 * H:3 * H], (B, H))
    b1_hn = jnp.broadcast_to(b1[:, 3 * H:4 * H], (B, H))

    # TODO(synk): nn.Dropout treated as identity (eval mode); no RNG dropout here.
    for t in range(2):                                            # seq_len = 2, static unroll
        # ----- GRU layer 0 (x-side precomputed above) -------------------------
        gi = gi_emb + gi_ctx[t]                                   # (B, 3H) [r|z|n]
        gh = jnp.dot(h_l0.astype(bf16), w0h_ref[...],
                     preferred_element_type=f32)                  # (B, 3H) [r|z|n]
        r = jax.nn.sigmoid(gi[:, 0:H] + gh[:, 0:H] + b0_r)
        z = jax.nn.sigmoid(gi[:, H:2 * H] + gh[:, H:2 * H] + b0_z)
        n = jnp.tanh(gi[:, 2 * H:3 * H] + b0_in + r * (gh[:, 2 * H:3 * H] + b0_hn))
        h_l0 = (1.0 - z) * n + z * h_l0

        # ----- GRU layer 1 -----------------------------------------------------
        g1i = jnp.dot(h_l0.astype(bf16), w1x_ref[...], preferred_element_type=f32)
        g1h = jnp.dot(h_l1.astype(bf16), w1h_ref[...], preferred_element_type=f32)
        r1 = jax.nn.sigmoid(g1i[:, 0:H] + g1h[:, 0:H] + b1_r)
        z1 = jax.nn.sigmoid(g1i[:, H:2 * H] + g1h[:, H:2 * H] + b1_z)
        n1 = jnp.tanh(g1i[:, 2 * H:3 * H] + b1_in + r1 * (g1h[:, 2 * H:3 * H] + b1_hn))
        h_l1 = (1.0 - z1) * n1 + z1 * h_l1

    hnew_ref[0] = h_l0
    hnew_ref[1] = h_l1

    # output = Linear(cat(emb, hidden[0], context[0])) -- kept in f32, split into
    # three small dots so no concatenate temp is materialized.
    pred_ref[...] = (jnp.dot(emb, woe_ref[...], preferred_element_type=f32)
                     + jnp.dot(h_l0, woh_ref[...], preferred_element_type=f32)
                     + jnp.dot(ctx0, woc_ref[...], preferred_element_type=f32)
                     + bout_ref[...])


# --------------------------- host-side param prep ----------------------------

def prepare_decoder_params(params):
    """One-time layout prep: transpose weights to x@W form with all 3 gates packed
    in one contiguous 3H-wide block (no lane padding), bf16 GRU matmul weights,
    pre-summed r/z biases, f32 output projection."""
    f32 = jnp.float32
    bf16 = jnp.bfloat16

    emb_tbl = jnp.asarray(params["embedding"], f32)
    V, E = emb_tbl.shape
    H = params["w_hh0"].shape[1]
    O = params["w_out"].shape[0]

    w_ih0 = jnp.asarray(params["w_ih0"], f32)    # (3H, E+H): input = [emb, ctx]
    w_hh0 = jnp.asarray(params["w_hh0"], f32)    # (3H, H)
    w_ih1 = jnp.asarray(params["w_ih1"], f32)    # (3H, H)
    w_hh1 = jnp.asarray(params["w_hh1"], f32)    # (3H, H)
    w_out = jnp.asarray(params["w_out"], f32)    # (O, E+2H)

    # GRU matmul weights: real (unpadded) shapes, bf16 for native MXU + half DMA bytes.
    w0e = w_ih0[:, :E].T.astype(bf16)            # (E, 3H)  emb part of layer-0 input
    w0c = w_ih0[:, E:].T.astype(bf16)            # (H, 3H)  ctx part of layer-0 input
    w0h = w_hh0.T.astype(bf16)                   # (H, 3H)  layer-0 hidden weight
    w1x = w_ih1.T.astype(bf16)                   # (H, 3H)  layer-1 input weight
    w1h = w_hh1.T.astype(bf16)                   # (H, 3H)  layer-1 hidden weight

    def bias_pack(b_i, b_h):
        # layout: [r_sum | z_sum | n_ih | n_hh]  -> (1, 4H) f32
        b_i = jnp.asarray(b_i, f32).reshape(-1)
        b_h = jnp.asarray(b_h, f32).reshape(-1)
        return jnp.concatenate([b_i[0:H] + b_h[0:H],
                                b_i[H:2 * H] + b_h[H:2 * H],
                                b_i[2 * H:3 * H],
                                b_h[2 * H:3 * H]]).reshape(1, 4 * H)

    b0 = bias_pack(params["b_ih0"], params["b_hh0"])
    b1 = bias_pack(params["b_ih1"], params["b_hh1"])

    # output projection split by input chunk (emb | hidden[0] | context[0]), f32.
    woe = w_out[:, :E].T                         # (E, O)
    woh = w_out[:, E:E + H].T                    # (H, O)
    woc = w_out[:, E + H:].T                     # (H, O)
    bout = jnp.asarray(params["b_out"], f32).reshape(1, O)

    # embedding table: pad rows only to a sublane multiple (one-time, tiny), f32.
    Vp = _round_up(V, 8)
    tbl = jnp.zeros((Vp, E), f32).at[:V, :].set(emb_tbl)

    return dict(tbl=tbl, w0e=w0e, w0c=w0c, w0h=w0h, b0=b0,
                w1x=w1x, w1h=w1h, b1=b1,
                woe=woe, woh=woh, woc=woc, bout=bout)


# ------------------------------ forward wrapper -------------------------------

@jax.jit
def embedding_decoder_forward(input_ids, hidden, context, prep):
    """Pallas-backed forward. Returns (prediction, new_hidden)."""
    B = input_ids.shape[0]
    H = hidden.shape[-1]
    E = prep["tbl"].shape[1]
    O = prep["bout"].shape[1]
    Vp = prep["tbl"].shape[0]

    ids = input_ids.astype(jnp.int32).reshape(B, 1)
    hidden = hidden.astype(jnp.float32)
    context = context.astype(jnp.float32)

    args = (ids, prep["tbl"], context, hidden,
            prep["w0e"], prep["w0c"], prep["w0h"], prep["b0"],
            prep["w1x"], prep["w1h"], prep["b1"],
            prep["woe"], prep["woh"], prep["woc"], prep["bout"])

    out_shape = (jax.ShapeDtypeStruct((B, O), jnp.float32),
                 jax.ShapeDtypeStruct((2, B, H), jnp.float32))

    # Advisory cost estimate so XLA can overlap this (DMA-bound) call with the
    # surrounding per-token work.
    # TODO(synk): for autoregressive decoding, prefetch next-step weights across
    # calls (cross-pallas_call DMA future) instead of re-streaming from HBM.
    flops = 2 * B * (Vp * E + E * 3 * H + 2 * H * 3 * H
                     + 2 * 3 * H * 3 * H + (E + 2 * H) * O)
    transcendentals = 2 * 2 * 3 * B * H
    bytes_accessed = (sum(int(a.size) * a.dtype.itemsize for a in args)
                      + sum(math.prod(s.shape) * 4 for s in out_shape))

    vmem = pl.BlockSpec(memory_space=pltpu.MemorySpace.VMEM)
    kernel = functools.partial(decoder_kernel, hid=H)

    pred, hnew = pl.pallas_call(
        kernel,
        out_shape=out_shape,
        in_specs=[vmem] * len(args),
        out_specs=(vmem, vmem),
        cost_estimate=pl.CostEstimate(flops=flops,
                                      transcendentals=transcendentals,
                                      bytes_accessed=bytes_accessed),
    )(*args)
    return pred, hnew


# ------------------------------ pure-JAX reference ----------------------------

def _gru_cell_ref(x, h, w_ih, w_hh, b_ih, b_hh, H):
    gi = jnp.dot(x, w_ih.T) + b_ih
    gh = jnp.dot(h, w_hh.T) + b_hh
    r = jax.nn.sigmoid(gi[:, 0:H] + gh[:, 0:H])
    z = jax.nn.sigmoid(gi[:, H:2 * H] + gh[:, H:2 * H])
    n = jnp.tanh(gi[:, 2 * H:3 * H] + r * gh[:, 2 * H:3 * H])
    return (1.0 - z) * n + z * h


def reference_forward(input_ids, hidden, context, params):
    """Pure-JAX reference mirroring the PyTorch forward (eval mode)."""
    H = hidden.shape[-1]
    emb = params["embedding"][input_ids]                          # (B, E)
    h_l0, h_l1 = hidden[0], hidden[1]
    for t in range(2):
        x_t = jnp.concatenate([emb, context[t]], axis=1)
        h_l0 = _gru_cell_ref(x_t, h_l0, params["w_ih0"], params["w_hh0"],
                             params["b_ih0"], params["b_hh0"], H)
        h_l1 = _gru_cell_ref(h_l0, h_l1, params["w_ih1"], params["w_hh1"],
                             params["b_ih1"], params["b_hh1"], H)
    out_in = jnp.concatenate([emb, h_l0, context[0]], axis=1)
    pred = jnp.dot(out_in, params["w_out"].T) + params["b_out"]
    return pred, jnp.stack([h_l0, h_l1], axis=0)


def make_params(key, vocab, emb_dim, hid_dim, out_dim):
    ks = jax.random.split(key, 12)
    s = 0.1
    return {
        "embedding": jax.random.normal(ks[0], (vocab, emb_dim), jnp.float32) * s,
        # GRU layer 0: input size = emb_dim + hid_dim
        "w_ih0": jax.random.normal(ks[1], (3 * hid_dim, emb_dim + hid_dim), jnp.float32) * s,
        "w_hh0": jax.random.normal(ks[2], (3 * hid_dim, hid_dim), jnp.float32) * s,
        "b_ih0": jax.random.normal(ks[3], (1, 3 * hid_dim), jnp.float32) * s,
        "b_hh0": jax.random.normal(ks[4], (1, 3 * hid_dim), jnp.float32) * s,
        # GRU layer 1: input size = hid_dim
        "w_ih1": jax.random.normal(ks[5], (3 * hid_dim, hid_dim), jnp.float32) * s,
        "w_hh1": jax.random.normal(ks[6], (3 * hid_dim, hid_dim), jnp.float32) * s,
        "b_ih1": jax.random.normal(ks[7], (1, 3 * hid_dim), jnp.float32) * s,
        "b_hh1": jax.random.normal(ks[8], (1, 3 * hid_dim), jnp.float32) * s,
        # out: Linear(emb_dim + 2*hid_dim, out_dim)
        "w_out": jax.random.normal(ks[9], (out_dim, emb_dim + 2 * hid_dim), jnp.float32) * s,
        "b_out": jax.random.normal(ks[10], (1, out_dim), jnp.float32) * s,
    }


if __name__ == "__main__":
    B, VOCAB, EMB, HID, OUT = 8, 50, 32, 32, 40

    key = jax.random.PRNGKey(0)
    k_par, k_ids, k_hid, k_ctx = jax.random.split(key, 4)

    params = make_params(k_par, VOCAB, EMB, HID, OUT)
    input_ids = jax.random.randint(k_ids, (B,), 0, VOCAB, dtype=jnp.int32)
    hidden = jax.random.normal(k_hid, (2, B, HID), jnp.float32)
    context = jax.random.normal(k_ctx, (2, B, HID), jnp.float32)

    prep = prepare_decoder_params(params)   # one-time host-side layout prep

    pred, h_new = embedding_decoder_forward(input_ids, hidden, context, prep)
    pred = jax.block_until_ready(pred)
    h_new = jax.block_until_ready(h_new)

    pred_ref, h_ref = reference_forward(input_ids, hidden, context, params)
    assert pred.shape == (B, OUT) and h_new.shape == (2, B, HID)
    # bf16 MXU weights -> relaxed tolerance vs the all-f32 reference.
    assert jnp.allclose(pred, pred_ref, atol=5e-2, rtol=5e-2), \
        float(jnp.max(jnp.abs(pred - pred_ref)))
    assert jnp.allclose(h_new, h_ref, atol=5e-2, rtol=5e-2), \
        float(jnp.max(jnp.abs(h_new - h_ref)))

    print("KERNEL_OK")
</pallas_src>

<mosaic_0001>
module attributes {stable_mosaic.version = 11 : i64} {
  func.func @decoder_kernel(%arg0: memref<8x1xi32, #tpu.memory_space<vmem>>, %arg1: memref<56x32xf32, #tpu.memory_space<vmem>>, %arg2: memref<2x8x32xf32, #tpu.memory_space<vmem>>, %arg3: memref<2x8x32xf32, #tpu.memory_space<vmem>>, %arg4: memref<32x96xbf16, #tpu.memory_space<vmem>>, %arg5: memref<32x96xbf16, #tpu.memory_space<vmem>>, %arg6: memref<32x96xbf16, #tpu.memory_space<vmem>>, %arg7: memref<1x128xf32, #tpu.memory_space<vmem>>, %arg8: memref<32x96xbf16, #tpu.memory_space<vmem>>, %arg9: memref<32x96xbf16, #tpu.memory_space<vmem>>, %arg10: memref<1x128xf32, #tpu.memory_space<vmem>>, %arg11: memref<32x40xf32, #tpu.memory_space<vmem>>, %arg12: memref<32x40xf32, #tpu.memory_space<vmem>>, %arg13: memref<32x40xf32, #tpu.memory_space<vmem>>, %arg14: memref<1x40xf32, #tpu.memory_space<vmem>>, %arg15: memref<8x40xf32, #tpu.memory_space<vmem>>, %arg16: memref<2x8x32xf32, #tpu.memory_space<vmem>>) attributes {dimension_semantics = [], scalar_prefetch = 0 : i64, scratch_operands = 0 : i64, tpu.core_type = #tpu.core_type<tc>} {
    %c0 = arith.constant 0 : index
    %c0_0 = arith.constant 0 : index
    %0 = vector.load %arg0[%c0, %c0_0] : memref<8x1xi32, #tpu.memory_space<vmem>>, vector<8x1xi32>
    %1 = tpu.iota {dimensions = array<i32: 1>} : vector<8x56xi32>
    %2 = vector.broadcast %0 : vector<8x1xi32> to vector<8x56xi32>
    %3 = arith.cmpi eq, %1, %2 : vector<8x56xi32>
    %4 = arith.extui %3 : vector<8x56xi1> to vector<8x56xi32>
    %5 = arith.sitofp %4 : vector<8x56xi32> to vector<8x56xf32>
    %c0_1 = arith.constant 0 : index
    %c0_2 = arith.constant 0 : index
    %6 = vector.load %arg1[%c0_1, %c0_2] : memref<56x32xf32, #tpu.memory_space<vmem>>, vector<56x32xf32>
    %cst = arith.constant dense<0.000000e+00> : vector<8x32xf32>
    %7 = tpu.matmul %5, %6, %cst {dimension_numbers = #tpu.dot_dimension_numbers<[1], [0], [0], [1], [0, 0, 1, 1], [], []>} : vector<8x56xf32>, vector<56x32xf32>, vector<8x32xf32> -> vector<8x32xf32>
    %c0_3 = arith.constant 0 : index
    %c0_4 = arith.constant 0 : index
    %c0_5 = arith.constant 0 : index
    %8 = vector.load %arg3[%c0_3, %c0_4, %c0_5] : memref<2x8x32xf32, #tpu.memory_space<vmem>>, vector<1x8x32xf32>
    %9 = vector.shape_cast %8 : vector<1x8x32xf32> to vector<8x32xf32>
    %c1 = arith.constant 1 : index
    %c0_6 = arith.constant 0 : index
    %c0_7 = arith.constant 0 : index
    %10 = vector.load %arg3[%c1, %c0_6, %c0_7] : memref<2x8x32xf32, #tpu.memory_space<vmem>>, vector<1x8x32xf32>
    %11 = vector.shape_cast %10 : vector<1x8x32xf32> to vector<8x32xf32>
    %c0_8 = arith.constant 0 : index
    %c0_9 = arith.constant 0 : index
    %c0_10 = arith.constant 0 : index
    %12 = vector.load %arg2[%c0_8, %c0_9, %c0_10] : memref<2x8x32xf32, #tpu.memory_space<vmem>>, vector<1x8x32xf32>
    %13 = vector.shape_cast %12 : vector<1x8x32xf32> to vector<8x32xf32>
    %c1_11 = arith.constant 1 : index
    %c0_12 = arith.constant 0 : index
    %c0_13 = arith.constant 0 : index
    %14 = vector.load %arg2[%c1_11, %c0_12, %c0_13] : memref<2x8x32xf32, #tpu.memory_space<vmem>>, vector<1x8x32xf32>
    %15 = vector.shape_cast %14 : vector<1x8x32xf32> to vector<8x32xf32>
    %16 = arith.truncf %7 : vector<8x32xf32> to vector<8x32xbf16>
    %c0_14 = arith.constant 0 : index
    %c0_15 = arith.constant 0 : index
    %17 = vector.load %arg4[%c0_14, %c0_15] : memref<32x96xbf16, #tpu.memory_space<vmem>>, vector<32x96xbf16>
    %cst_16 = arith.constant dense<0.000000e+00> : vector<8x96xf32>
    %18 = tpu.matmul %16, %17, %cst_16 {dimension_numbers = #tpu.dot_dimension_numbers<[1], [0], [0], [1], [0, 0, 1, 1], [], []>} : vector<8x32xbf16>, vector<32x96xbf16>, vector<8x96xf32> -> vector<8x96xf32>
    %19 = arith.truncf %13 : vector<8x32xf32> to vector<8x32xbf16>
    %c0_17 = arith.constant 0 : index
    %c0_18 = arith.constant 0 : index
    %20 = vector.load %arg5[%c0_17, %c0_18] : memref<32x96xbf16, #tpu.memory_space<vmem>>, vector<32x96xbf16>
    %cst_19 = arith.constant dense<0.000000e+00> : vector<8x96xf32>
    %21 = tpu.matmul %19, %20, %cst_19 {dimension_numbers = #tpu.dot_dimension_numbers<[1], [0], [0], [1], [0, 0, 1, 1], [], []>} : vector<8x32xbf16>, vector<32x96xbf16>, vector<8x96xf32> -> vector<8x96xf32>
    %22 = arith.truncf %15 : vector<8x32xf32> to vector<8x32xbf16>
    %c0_20 = arith.constant 0 : index
    %c0_21 = arith.constant 0 : index
    %23 = vector.load %arg5[%c0_20, %c0_21] : memref<32x96xbf16, #tpu.memory_space<vmem>>, vector<32x96xbf16>
    %cst_22 = arith.constant dense<0.000000e+00> : vector<8x96xf32>
    %24 = tpu.matmul %22, %23, %cst_22 {dimension_numbers = #tpu.dot_dimension_numbers<[1], [0], [0], [1], [0, 0, 1, 1], [], []>} : vector<8x32xbf16>, vector<32x96xbf16>, vector<8x96xf32> -> vector<8x96xf32>
    %c0_23 = arith.constant 0 : index
    %c0_24 = arith.constant 0 : index
    %25 = vector.load %arg7[%c0_23, %c0_24] : memref<1x128xf32, #tpu.memory_space<vmem>>, vector<1x128xf32>
    %c0_25 = arith.constant 0 : index
    %c0_26 = arith.constant 0 : index
    %26 = vector.load %arg10[%c0_25, %c0_26] : memref<1x128xf32, #tpu.memory_space<vmem>>, vector<1x128xf32>
    %27 = vector.extract_strided_slice %25 {offsets = [0, 0], sizes = [1, 32], strides = [1, 1]} : vector<1x128xf32> to vector<1x32xf32>
    %28 = vector.shape_cast %27 : vector<1x32xf32> to vector<1x32xf32>
    %29 = vector.broadcast %28 : vector<1x32xf32> to vector<8x32xf32>
    %30 = vector.extract_strided_slice %25 {offsets = [0, 32], sizes = [1, 32], strides = [1, 1]} : vector<1x128xf32> to vector<1x32xf32>
    %31 = vector.shape_cast %30 : vector<1x32xf32> to vector<1x32xf32>
    %32 = vector.broadcast %31 : vector<1x32xf32> to vector<8x32xf32>
    %33 = vector.extract_strided_slice %25 {offsets = [0, 64], sizes = [1, 32], strides = [1, 1]} : vector<1x128xf32> to vector<1x32xf32>
    %34 = vector.shape_cast %33 : vector<1x32xf32> to vector<1x32xf32>
    %35 = vector.broadcast %34 : vector<1x32xf32> to vector<8x32xf32>
    %36 = vector.extract_strided_slice %25 {offsets = [0, 96], sizes = [1, 32], strides = [1, 1]} : vector<1x128xf32> to vector<1x32xf32>
    %37 = vector.shape_cast %36 : vector<1x32xf32> to vector<1x32xf32>
    %38 = vector.broadcast %37 : vector<1x32xf32> to vector<8x32xf32>
    %39 = vector.extract_strided_slice %26 {offsets = [0, 0], sizes = [1, 32], strides = [1, 1]} : vector<1x128xf32> to vector<1x32xf32>
    %40 = vector.shape_cast %39 : vector<1x32xf32> to vector<1x32xf32>
    %41 = vector.broadcast %40 : vector<1x32xf32> to vector<8x32xf32>
    %42 = vector.extract_strided_slice %26 {offsets = [0, 32], sizes = [1, 32], strides = [1, 1]} : vector<1x128xf32> to vector<1x32xf32>
    %43 = vector.shape_cast %42 : vector<1x32xf32> to vector<1x32xf32>
    %44 = vector.broadcast %43 : vector<1x32xf32> to vector<8x32xf32>
    %45 = vector.extract_strided_slice %26 {offsets = [0, 64], sizes = [1, 32], strides = [1, 1]} : vector<1x128xf32> to vector<1x32xf32>
    %46 = vector.shape_cast %45 : vector<1x32xf32> to vector<1x32xf32>
    %47 = vector.broadcast %46 : vector<1x32xf32> to vector<8x32xf32>
    %48 = vector.extract_strided_slice %26 {offsets = [0, 96], sizes = [1, 32], strides = [1, 1]} : vector<1x128xf32> to vector<1x32xf32>
    %49 = vector.shape_cast %48 : vector<1x32xf32> to vector<1x32xf32>
    %50 = vector.broadcast %49 : vector<1x32xf32> to vector<8x32xf32>
    %51 = arith.addf %18, %21 : vector<8x96xf32>
    %52 = arith.truncf %9 : vector<8x32xf32> to vector<8x32xbf16>
    %c0_27 = arith.constant 0 : index
    %c0_28 = arith.constant 0 : index
    %53 = vector.load %arg6[%c0_27, %c0_28] : memref<32x96xbf16, #tpu.memory_space<vmem>>, vector<32x96xbf16>
    %cst_29 = arith.constant dense<0.000000e+00> : vector<8x96xf32>
    %54 = tpu.matmul %52, %53, %cst_29 {dimension_numbers = #tpu.dot_dimension_numbers<[1], [0], [0], [1], [0, 0, 1, 1], [], []>} : vector<8x32xbf16>, vector<32x96xbf16>, vector<8x96xf32> -> vector<8x96xf32>
    %55 = vector.extract_strided_slice %51 {offsets = [0, 0], sizes = [8, 32], strides = [1, 1]} : vector<8x96xf32> to vector<8x32xf32>
    %56 = vector.extract_strided_slice %54 {offsets = [0, 0], sizes = [8, 32], strides = [1, 1]} : vector<8x96xf32> to vector<8x32xf32>
    %57 = arith.addf %55, %56 : vector<8x32xf32>
    %58 = arith.addf %57, %29 : vector<8x32xf32>
    %59 = arith.negf %58 : vector<8x32xf32>
    %60 = math.exp %59 : vector<8x32xf32>
    %cst_30 = arith.constant 1.000000e+00 : f32
    %61 = vector.broadcast %cst_30 : f32 to vector<8x32xf32>
    %62 = arith.addf %61, %60 : vector<8x32xf32>
    %63 = arith.divf %61, %62 : vector<8x32xf32>
    %64 = vector.extract_strided_slice %51 {offsets = [0, 32], sizes = [8, 32], strides = [1, 1]} : vector<8x96xf32> to vector<8x32xf32>
    %65 = vector.extract_strided_slice %54 {offsets = [0, 32], sizes = [8, 32], strides = [1, 1]} : vector<8x96xf32> to vector<8x32xf32>
    %66 = arith.addf %64, %65 : vector<8x32xf32>
    %67 = arith.addf %66, %32 : vector<8x32xf32>
    %68 = arith.negf %67 : vector<8x32xf32>
    %69 = math.exp %68 : vector<8x32xf32>
    %cst_31 = arith.constant 1.000000e+00 : f32
    %70 = vector.broadcast %cst_31 : f32 to vector<8x32xf32>
    %71 = arith.addf %70, %69 : vector<8x32xf32>
    %72 = arith.divf %70, %71 : vector<8x32xf32>
    %73 = vector.extract_strided_slice %51 {offsets = [0, 64], sizes = [8, 32], strides = [1, 1]} : vector<8x96xf32> to vector<8x32xf32>
    %74 = arith.addf %73, %35 : vector<8x32xf32>
    %75 = vector.extract_strided_slice %54 {offsets = [0, 64], sizes = [8, 32], strides = [1, 1]} : vector<8x96xf32> to vector<8x32xf32>
    %76 = arith.addf %75, %38 : vector<8x32xf32>
    %77 = arith.mulf %63, %76 : vector<8x32xf32>
    %78 = arith.addf %74, %77 : vector<8x32xf32>
    %79 = math.tanh %78 : vector<8x32xf32>
    %cst_32 = arith.constant 1.000000e+00 : f32
    %80 = vector.broadcast %cst_32 : f32 to vector<8x32xf32>
    %81 = arith.subf %80, %72 : vector<8x32xf32>
    %82 = arith.mulf %81, %79 : vector<8x32xf32>
    %83 = arith.mulf %72, %9 : vector<8x32xf32>
    %84 = arith.addf %82, %83 : vector<8x32xf32>
    %85 = arith.truncf %84 : vector<8x32xf32> to vector<8x32xbf16>
    %c0_33 = arith.constant 0 : index
    %c0_34 = arith.constant 0 : index
    %86 = vector.load %arg8[%c0_33, %c0_34] : memref<32x96xbf16, #tpu.memory_space<vmem>>, vector<32x96xbf16>
    %cst_35 = arith.constant dense<0.000000e+00> : vector<8x96xf32>
    %87 = tpu.matmul %85, %86, %cst_35 {dimension_numbers = #tpu.dot_dimension_numbers<[1], [0], [0], [1], [0, 0, 1, 1], [], []>} : vector<8x32xbf16>, vector<32x96xbf16>, vector<8x96xf32> -> vector<8x96xf32>
    %88 = arith.truncf %11 : vector<8x32xf32> to vector<8x32xbf16>
    %c0_36 = arith.constant 0 : index
    %c0_37 = arith.constant 0 : index
    %89 = vector.load %arg9[%c0_36, %c0_37] : memref<32x96xbf16, #tpu.memory_space<vmem>>, vector<32x96xbf16>
    %cst_38 = arith.constant dense<0.000000e+00> : vector<8x96xf32>
    %90 = tpu.matmul %88, %89, %cst_38 {dimension_numbers = #tpu.dot_dimension_numbers<[1], [0], [0], [1], [0, 0, 1, 1], [], []>} : vector<8x32xbf16>, vector<32x96xbf16>, vector<8x96xf32> -> vector<8x96xf32>
    %91 = vector.extract_strided_slice %87 {offsets = [0, 0], sizes = [8, 32], strides = [1, 1]} : vector<8x96xf32> to vector<8x32xf32>
    %92 = vector.extract_strided_slice %90 {offsets = [0, 0], sizes = [8, 32], strides = [1, 1]} : vector<8x96xf32> to vector<8x32xf32>
    %93 = arith.addf %91, %92 : vector<8x32xf32>
    %94 = arith.addf %93, %41 : vector<8x32xf32>
    %95 = arith.negf %94 : vector<8x32xf32>
    %96 = math.exp %95 : vector<8x32xf32>
    %cst_39 = arith.constant 1.000000e+00 : f32
    %97 = vector.broadcast %cst_39 : f32 to vector<8x32xf32>
    %98 = arith.addf %97, %96 : vector<8x32xf32>
    %99 = arith.divf %97, %98 : vector<8x32xf32>
    %100 = vector.extract_strided_slice %87 {offsets = [0, 32], sizes = [8, 32], strides = [1, 1]} : vector<8x96xf32> to vector<8x32xf32>
    %101 = vector.extract_strided_slice %90 {offsets = [0, 32], sizes = [8, 32], strides = [1, 1]} : vector<8x96xf32> to vector<8x32xf32>
    %102 = arith.addf %100, %101 : vector<8x32xf32>
    %103 = arith.addf %102, %44 : vector<8x32xf32>
    %104 = arith.negf %103 : vector<8x32xf32>
    %105 = math.exp %104 : vector<8x32xf32>
    %cst_40 = arith.constant 1.000000e+00 : f32
    %106 = vector.broadcast %cst_40 : f32 to vector<8x32xf32>
    %107 = arith.addf %106, %105 : vector<8x32xf32>
    %108 = arith.divf %106, %107 : vector<8x32xf32>
    %109 = vector.extract_strided_slice %87 {offsets = [0, 64], sizes = [8, 32], strides = [1, 1]} : vector<8x96xf32> to vector<8x32xf32>
    %110 = arith.addf %109, %47 : vector<8x32xf32>
    %111 = vector.extract_strided_slice %90 {offsets = [0, 64], sizes = [8, 32], strides = [1, 1]} : vector<8x96xf32> to vector<8x32xf32>
    %112 = arith.addf %111, %50 : vector<8x32xf32>
    %113 = arith.mulf %99, %112 : vector<8x32xf32>
    %114 = arith.addf %110, %113 : vector<8x32xf32>
    %115 = math.tanh %114 : vector<8x32xf32>
    %cst_41 = arith.constant 1.000000e+00 : f32
    %116 = vector.broadcast %cst_41 : f32 to vector<8x32xf32>
    %117 = arith.subf %116, %108 : vector<8x32xf32>
    %118 = arith.mulf %117, %115 : vector<8x32xf32>
    %119 = arith.mulf %108, %11 : vector<8x32xf32>
    %120 = arith.addf %118, %119 : vector<8x32xf32>
    %121 = arith.addf %18, %24 : vector<8x96xf32>
    %122 = arith.truncf %84 : vector<8x32xf32> to vector<8x32xbf16>
    %c0_42 = arith.constant 0 : index
    %c0_43 = arith.constant 0 : index
    %123 = vector.load %arg6[%c0_42, %c0_43] : memref<32x96xbf16, #tpu.memory_space<vmem>>, vector<32x96xbf16>
    %cst_44 = arith.constant dense<0.000000e+00> : vector<8x96xf32>
    %124 = tpu.matmul %122, %123, %cst_44 {dimension_numbers = #tpu.dot_dimension_numbers<[1], [0], [0], [1], [0, 0, 1, 1], [], []>} : vector<8x32xbf16>, vector<32x96xbf16>, vector<8x96xf32> -> vector<8x96xf32>
    %125 = vector.extract_strided_slice %121 {offsets = [0, 0], sizes = [8, 32], strides = [1, 1]} : vector<8x96xf32> to vector<8x32xf32>
    %126 = vector.extract_strided_slice %124 {offsets = [0, 0], sizes = [8, 32], strides = [1, 1]} : vector<8x96xf32> to vector<8x32xf32>
    %127 = arith.addf %125, %126 : vector<8x32xf32>
    %128 = arith.addf %127, %29 : vector<8x32xf32>
    %129 = arith.negf %128 : vector<8x32xf32>
    %130 = math.exp %129 : vector<8x32xf32>
    %cst_45 = arith.constant 1.000000e+00 : f32
    %131 = vector.broadcast %cst_45 : f32 to vector<8x32xf32>
    %132 = arith.addf %131, %130 : vector<8x32xf32>
    %133 = arith.divf %131, %132 : vector<8x32xf32>
    %134 = vector.extract_strided_slice %121 {offsets = [0, 32], sizes = [8, 32], strides = [1, 1]} : vector<8x96xf32> to vector<8x32xf32>
    %135 = vector.extract_strided_slice %124 {offsets = [0, 32], sizes = [8, 32], strides = [1, 1]} : vector<8x96xf32> to vector<8x32xf32>
    %136 = arith.addf %134, %135 : vector<8x32xf32>
    %137 = arith.addf %136, %32 : vector<8x32xf32>
    %138 = arith.negf %137 : vector<8x32xf32>
    %139 = math.exp %138 : vector<8x32xf32>
    %cst_46 = arith.constant 1.000000e+00 : f32
    %140 = vector.broadcast %cst_46 : f32 to vector<8x32xf32>
    %141 = arith.addf %140, %139 : vector<8x32xf32>
    %142 = arith.divf %140, %141 : vector<8x32xf32>
    %143 = vector.extract_strided_slice %121 {offsets = [0, 64], sizes = [8, 32], strides = [1, 1]} : vector<8x96xf32> to vector<8x32xf32>
    %144 = arith.addf %143, %35 : vector<8x32xf32>
    %145 = vector.extract_strided_slice %124 {offsets = [0, 64], sizes = [8, 32], strides = [1, 1]} : vector<8x96xf32> to vector<8x32xf32>
    %146 = arith.addf %145, %38 : vector<8x32xf32>
    %147 = arith.mulf %133, %146 : vector<8x32xf32>
    %148 = arith.addf %144, %147 : vector<8x32xf32>
    %149 = math.tanh %148 : vector<8x32xf32>
    %cst_47 = arith.constant 1.000000e+00 : f32
    %150 = vector.broadcast %cst_47 : f32 to vector<8x32xf32>
    %151 = arith.subf %150, %142 : vector<8x32xf32>
    %152 = arith.mulf %151, %149 : vector<8x32xf32>
    %153 = arith.mulf %142, %84 : vector<8x32xf32>
    %154 = arith.addf %152, %153 : vector<8x32xf32>
    %155 = arith.truncf %154 : vector<8x32xf32> to vector<8x32xbf16>
    %c0_48 = arith.constant 0 : index
    %c0_49 = arith.constant 0 : index
    %156 = vector.load %arg8[%c0_48, %c0_49] : memref<32x96xbf16, #tpu.memory_space<vmem>>, vector<32x96xbf16>
    %cst_50 = arith.constant dense<0.000000e+00> : vector<8x96xf32>
    %157 = tpu.matmul %155, %156, %cst_50 {dimension_numbers = #tpu.dot_dimension_numbers<[1], [0], [0], [1], [0, 0, 1, 1], [], []>} : vector<8x32xbf16>, vector<32x96xbf16>, vector<8x96xf32> -> vector<8x96xf32>
    %158 = arith.truncf %120 : vector<8x32xf32> to vector<8x32xbf16>
    %c0_51 = arith.constant 0 : index
    %c0_52 = arith.constant 0 : index
    %159 = vector.load %arg9[%c0_51, %c0_52] : memref<32x96xbf16, #tpu.memory_space<vmem>>, vector<32x96xbf16>
    %cst_53 = arith.constant dense<0.000000e+00> : vector<8x96xf32>
    %160 = tpu.matmul %158, %159, %cst_53 {dimension_numbers = #tpu.dot_dimension_numbers<[1], [0], [0], [1], [0, 0, 1, 1], [], []>} : vector<8x32xbf16>, vector<32x96xbf16>, vector<8x96xf32> -> vector<8x96xf32>
    %161 = vector.extract_strided_slice %157 {offsets = [0, 0], sizes = [8, 32], strides = [1, 1]} : vector<8x96xf32> to vector<8x32xf32>
    %162 = vector.extract_strided_slice %160 {offsets = [0, 0], sizes = [8, 32], strides = [1, 1]} : vector<8x96xf32> to vector<8x32xf32>
    %163 = arith.addf %161, %162 : vector<8x32xf32>
    %164 = arith.addf %163, %41 : vector<8x32xf32>
    %165 = arith.negf %164 : vector<8x32xf32>
    %166 = math.exp %165 : vector<8x32xf32>
    %cst_54 = arith.constant 1.000000e+00 : f32
    %167 = vector.broadcast %cst_54 : f32 to vector<8x32xf32>
    %168 = arith.addf %167, %166 : vector<8x32xf32>
    %169 = arith.divf %167, %168 : vector<8x32xf32>
    %170 = vector.extract_strided_slice %157 {offsets = [0, 32], sizes = [8, 32], strides = [1, 1]} : vector<8x96xf32> to vector<8x32xf32>
    %171 = vector.extract_strided_slice %160 {offsets = [0, 32], sizes = [8, 32], strides = [1, 1]} : vector<8x96xf32> to vector<8x32xf32>
    %172 = arith.addf %170, %171 : vector<8x32xf32>
    %173 = arith.addf %172, %44 : vector<8x32xf32>
    %174 = arith.negf %173 : vector<8x32xf32>
    %175 = math.exp %174 : vector<8x32xf32>
    %cst_55 = arith.constant 1.000000e+00 : f32
    %176 = vector.broadcast %cst_55 : f32 to vector<8x32xf32>
    %177 = arith.addf %176, %175 : vector<8x32xf32>
    %178 = arith.divf %176, %177 : vector<8x32xf32>
    %179 = vector.extract_strided_slice %157 {offsets = [0, 64], sizes = [8, 32], strides = [1, 1]} : vector<8x96xf32> to vector<8x32xf32>
    %180 = arith.addf %179, %47 : vector<8x32xf32>
    %181 = vector.extract_strided_slice %160 {offsets = [0, 64], sizes = [8, 32], strides = [1, 1]} : vector<8x96xf32> to vector<8x32xf32>
    %182 = arith.addf %181, %50 : vector<8x32xf32>
    %183 = arith.mulf %169, %182 : vector<8x32xf32>
    %184 = arith.addf %180, %183 : vector<8x32xf32>
    %185 = math.tanh %184 : vector<8x32xf32>
    %cst_56 = arith.constant 1.000000e+00 : f32
    %186 = vector.broadcast %cst_56 : f32 to vector<8x32xf32>
    %187 = arith.subf %186, %178 : vector<8x32xf32>
    %188 = arith.mulf %187, %185 : vector<8x32xf32>
    %189 = arith.mulf %178, %120 : vector<8x32xf32>
    %190 = arith.addf %188, %189 : vector<8x32xf32>
    %c0_57 = arith.constant 0 : index
    %c0_58 = arith.constant 0 : index
    %c0_59 = arith.constant 0 : index
    %191 = vector.load %arg16[%c0_57, %c0_58, %c0_59] : memref<2x8x32xf32, #tpu.memory_space<vmem>>, vector<1x8x32xf32>
    %192 = vector.shape_cast %191 : vector<1x8x32xf32> to vector<8x32xf32>
    %193 = vector.shape_cast %154 : vector<8x32xf32> to vector<1x8x32xf32>
    tpu.vector_store %arg16[%c0_57, %c0_58, %c0_59], %193 {strides = array<i32>} : memref<2x8x32xf32, #tpu.memory_space<vmem>>, vector<1x8x32xf32>,
    %c1_60 = arith.constant 1 : index
    %c0_61 = arith.constant 0 : index
    %c0_62 = arith.constant 0 : index
    %194 = vector.load %arg16[%c1_60, %c0_61, %c0_62] : memref<2x8x32xf32, #tpu.memory_space<vmem>>, vector<1x8x32xf32>
    %195 = vector.shape_cast %194 : vector<1x8x32xf32> to vector<8x32xf32>
    %196 = vector.shape_cast %190 : vector<8x32xf32> to vector<1x8x32xf32>
    tpu.vector_store %arg16[%c1_60, %c0_61, %c0_62], %196 {strides = array<i32>} : memref<2x8x32xf32, #tpu.memory_space<vmem>>, vector<1x8x32xf32>,
    %c0_63 = arith.constant 0 : index
    %c0_64 = arith.constant 0 : index
    %197 = vector.load %arg11[%c0_63, %c0_64] : memref<32x40xf32, #tpu.memory_space<vmem>>, vector<32x40xf32>
    %cst_65 = arith.constant dense<0.000000e+00> : vector<8x40xf32>
    %198 = tpu.matmul %7, %197, %cst_65 {dimension_numbers = #tpu.dot_dimension_numbers<[1], [0], [0], [1], [0, 0, 1, 1], [], []>} : vector<8x32xf32>, vector<32x40xf32>, vector<8x40xf32> -> vector<8x40xf32>
    %c0_66 = arith.constant 0 : index
    %c0_67 = arith.constant 0 : index
    %199 = vector.load %arg12[%c0_66, %c0_67] : memref<32x40xf32, #tpu.memory_space<vmem>>, vector<32x40xf32>
    %cst_68 = arith.constant dense<0.000000e+00> : vector<8x40xf32>
    %200 = tpu.matmul %154, %199, %cst_68 {dimension_numbers = #tpu.dot_dimension_numbers<[1], [0], [0], [1], [0, 0, 1, 1], [], []>} : vector<8x32xf32>, vector<32x40xf32>, vector<8x40xf32> -> vector<8x40xf32>
    %201 = arith.addf %198, %200 : vector<8x40xf32>
    %c0_69 = arith.constant 0 : index
    %c0_70 = arith.constant 0 : index
    %202 = vector.load %arg13[%c0_69, %c0_70] : memref<32x40xf32, #tpu.memory_space<vmem>>, vector<32x40xf32>
    %cst_71 = arith.constant dense<0.000000e+00> : vector<8x40xf32>
    %203 = tpu.matmul %13, %202, %cst_71 {dimension_numbers = #tpu.dot_dimension_numbers<[1], [0], [0], [1], [0, 0, 1, 1], [], []>} : vector<8x32xf32>, vector<32x40xf32>, vector<8x40xf32> -> vector<8x40xf32>
    %204 = arith.addf %201, %203 : vector<8x40xf32>
    %c0_72 = arith.constant 0 : index
    %c0_73 = arith.constant 0 : index
    %205 = vector.load %arg14[%c0_72, %c0_73] : memref<1x40xf32, #tpu.memory_space<vmem>>, vector<1x40xf32>
    %206 = vector.broadcast %205 : vector<1x40xf32> to vector<8x40xf32>
    %207 = arith.addf %204, %206 : vector<8x40xf32>
    %c0_74 = arith.constant 0 : index
    %c0_75 = arith.constant 0 : index
    %208 = vector.load %arg15[%c0_74, %c0_75] : memref<8x40xf32, #tpu.memory_space<vmem>>, vector<8x40xf32>
    tpu.vector_store %arg15[%c0_74, %c0_75], %207 {strides = array<i32>} : memref<8x40xf32, #tpu.memory_space<vmem>>, vector<8x40xf32>,
    return
  }
}

</mosaic_0001>

<bundles_post_ra>
// kernel: embedding_decoder_forward.1
= control target key start
LH: loop header
LB: loop body
LE: loop exit
PB: predicated region body
PF: predicated region fallthrough
CT: control target
= control target key end

     0   :  { %s1427_s0 = inlined_call_operand.vmem [shape: s32[8,1], index: 0, kind: input, shape index: {}]   ;;  %s1428_s1 = inlined_call_operand.vmem [shape: f32[56,32], index: 1, kind: input, shape index: {}]   ;;  %s1429_s2 = inlined_call_operand.hbm [shape: f32[2,8,32], index: 2, kind: input, shape index: {}]   ;;  %s1430_s3 = inlined_call_operand.hbm [shape: f32[2,8,32], index: 3, kind: input, shape index: {}]   ;;  %s1431_s4 = inlined_call_operand.hbm [shape: bf16[32,96], index: 4, kind: input, shape index: {}]   ;;  %s1432_s5 = inlined_call_operand.hbm [shape: bf16[32,96], index: 5, kind: input, shape index: {}]   ;;  %s1433_s6 = inlined_call_operand.hbm [shape: bf16[32,96], index: 6, kind: input, shape index: {}]   ;;  %s1434_s7 = inlined_call_operand.vmem [shape: f32[1,128], index: 7, kind: input, shape index: {}]   ;;  %s1435_s8 = inlined_call_operand.hbm [shape: bf16[32,96], index: 8, kind: input, shape index: {}]   ;;  %s1436_s9 = inlined_call_operand.hbm [shape: bf16[32,96], index: 9, kind: input, shape index: {}]   ;;  %s1437_s10 = inlined_call_operand.vmem [shape: f32[1,128], index: 10, kind: input, shape index: {}]   ;;  %s1438_s11 = inlined_call_operand.vmem [shape: f32[32,40], index: 11, kind: input, shape index: {}]   ;;  %s1439_s12 = inlined_call_operand.vmem [shape: f32[32,40], index: 12, kind: input, shape index: {}]   ;;  %s1440_s13 = inlined_call_operand.vmem [shape: f32[32,40], index: 13, kind: input, shape index: {}]   ;;  %s1441_s14 = inlined_call_operand.vmem [shape: f32[1,40], index: 14, kind: input, shape index: {}]   ;;  %s1442_s15 = inlined_call_operand.hbm [shape: f32[8,40], index: 15, kind: output, shape index: {0}]   ;;  %s1443_s16 = inlined_call_operand.hbm [shape: f32[2,8,32], index: 16, kind: output, shape index: {1}]  }
   0x1   :  { %1444 = sst [smem:[#allocation23_spill]] %s1427_s0 }
   0x2   :  { %22 = vsyncpa [#allocation3], 0 }
   0x3   :  { %23 = vsyncpa [#allocation6], 0 }
   0x4   :  { %24 = vsyncpa [#allocation9], 0 }
   0x5   :  { %25 = vsyncpa [#allocation12], 0 }
   0x6   :  { %26 = vsyncpa [#allocation4], 0 }
   0x7   :  { %27 = vsyncpa [#allocation16], 0  ;;  %s49_s23 = sshll.u32 %s1430_s3, 4  ;;  %s1119_s24 = smov [#allocation5]   ;;  %s50_s23 = int_to_ptr.hbm [resolvable:$true] %s49_s23 }
   0x8   :  { %s51_s25 = sshll.u32 %s1119_s24, 4  ;;  %s1120_s26 = smov 128   ;;  %s52_s25 = int_to_ptr.vmem [resolvable:$true] %s51_s25 }
   0x9   :  { %s1121_s27 = smov 8   ;;  %s75_s30 = sshll.u32 %s1432_s5, 4  ;;  %s76_s30 = int_to_ptr.hbm [resolvable:$true] %s75_s30 }
   0xa   :  { %57 = dma.hbm_to_vmem [thread:$0]  %s50_s23, 256, %s52_s25, [#allocation6], %s1120_s26, %s1120_s26, %s1121_s27  }
   0xb   :  { %s1122_s0 = smov [#allocation8]   ;;  %s103_s3 = sshll.u32 %s1435_s8, 4  ;;  %s104_s3 = int_to_ptr.hbm [resolvable:$true] %s103_s3 }
   0xc   :  { %s77_s17 = sshll.u32 %s1122_s0, 4  ;;  %s1123_s20 = smov 64   ;;  %s78_s17 = int_to_ptr.vmem [resolvable:$true] %s77_s17 }
   0xd   :  { %s1124_s21 = smov 4   ;;  %s36_s24 = sshll.u32 %s1429_s2, 4  ;;  %s37_s24 = int_to_ptr.hbm [resolvable:$true] %s36_s24 }
   0xe   :  { %83 = dma.hbm_to_vmem [thread:$0]  %s76_s30, 256, %s78_s17, [#allocation9], %s1123_s20, %s1123_s20, %s1124_s21  }
   0xf   :  { %s1125_s5 = smov [#allocation11]   ;;  %s1126_s8 = smov [#allocation2]  }
  0x10   :  { %s105_s25 = sshll.u32 %s1125_s5, 4  ;;  %s38_s28 = sshll.u32 %s1126_s8, 4  ;;  %s106_s25 = int_to_ptr.vmem [resolvable:$true] %s105_s25  ;;  %s39_s28 = int_to_ptr.vmem [resolvable:$true] %s38_s28 }
  0x11   :  { %111 = dma.hbm_to_vmem [thread:$0]  %s104_s3, 256, %s106_s25, [#allocation12], %s1123_s20, %s1123_s20, %s1124_s21  }
  0x12   :  { %s62_s18 = sshll.u32 %s1431_s4, 4  ;;  %s88_s17 = sshll.u32 %s1433_s6, 4  ;;  %s63_s18 = int_to_ptr.hbm [resolvable:$true] %s62_s18  ;;  %s89_s17 = int_to_ptr.hbm [resolvable:$true] %s88_s17 }
  0x13   :  { %44 = dma.hbm_to_vmem [thread:$0]  %s37_s24, 256, %s39_s28, [#allocation3], %s1120_s26, %s1120_s26, %s1121_s27  }
  0x14   :  { %s1127_s19 = smov [#allocation7]   ;;  %s1128_s3 = smov [#allocation10]  }
  0x15   :  { %s64_s22 = sshll.u32 %s1127_s19, 4  ;;  %s90_s4 = sshll.u32 %s1128_s3, 4  ;;  %s65_s22 = int_to_ptr.vmem [resolvable:$true] %s64_s22  ;;  %s91_s4 = int_to_ptr.vmem [resolvable:$true] %s90_s4 }
  0x16   :  { %70 = dma.hbm_to_vmem [thread:$0]  %s63_s18, 256, %s65_s22, [#allocation6], %s1123_s20, %s1123_s20, %s1124_s21  }
  0x17   :  { %s116_s25 = sshll.u32 %s1436_s9, 4  ;;  %s1129_s6 = smov [#allocation13]   ;;  %s117_s25 = int_to_ptr.hbm [resolvable:$true] %s116_s25 }
  0x18   :  { %96 = dma.hbm_to_vmem [thread:$0]  %s89_s17, 256, %s91_s4, [#allocation9], %s1123_s20, %s1123_s20, %s1124_s21  }
  0x19   :  { %s118_s24 = sshll.u32 %s1129_s6, 4  ;;  %s119_s24 = int_to_ptr.vmem [resolvable:$true] %s118_s24 }
  0x1a   :  { %124 = dma.hbm_to_vmem [thread:$0]  %s117_s25, 256, %s119_s24, [#allocation12], %s1123_s20, %s1123_s20, %s1124_s21  }
  0x1b   :  { %1107 = dma.done.wait [#allocation3], 256  }
  0x1c   :  { %1108 = vsyncadd [#allocation3], 4294967040 }
  0x1d   :  { %1109 = dma.done.wait [#allocation6], 512  }
  0x1e   :  { %1110 = vsyncadd [#allocation6], 4294966784 }
  0x1f   :  { %1111 = dma.done.wait [#allocation9], 512  }
  0x20   :  { %1112 = vsyncadd [#allocation9], 4294966784 }
  0x21   :  { %1113 = dma.done.wait [#allocation12], 512  }
  0x22   :  { %1114 = vsyncadd [#allocation12], 4294966784  ;;  %v1130_v0 = vmov 0   ;;  %s1445_s28 = sld [smem:[#allocation23_spill]]  ;;  %v179_v2 = vld [vmem:[%s1428_s1 + $0x30] sm:$0xff]  ;;  %v178_v3 = vld [vmem:[%s1428_s1 + $0x28] sm:$0xff]  ;;  %v165_v19 = vlaneseq }
  0x23   :  { %863 = vset.pattern.permute.xlu0 %v1130_v0  ;;  %193 = vmatpush.msra.mxu0 %v179_v2  ;;  %v177_v4 = vld [vmem:[%s1428_s1 + $0x20] sm:$0xff]  ;;  %v176_v5 = vld [vmem:[%s1428_s1 + $0x18] sm:$0xff]  ;;  %v175_v6 = vld [vmem:[%s1428_s1 + $0x10] sm:$0xff]  ;;  %s1131_s9 = smov 96   ;;  %vm227_vm0 = vcmask 261120   ;;  %vm180_vm1 = vcmask 457728  }
  0x24   :  { %v174_v7 = vld [vmem:[%s1428_s1 + $0x8] sm:$0xff]  ;;  %v173_v8 = vld [vmem:[%s1428_s1] sm:$0xff]  ;;  %v839_v12 = vld [vmem:[#allocation8 + $0x8] sm:$0xff]  ;;  %v166_v20 = vand.u32 127, %v165_v19  ;;  %v1132_v22 = vmov 0.0   ;;  %s1133_s1 = smov 32  }
  0x25   :  { %194 = vmatpush.msra.mxu0 %v178_v3  ;;  %v841_v9 = vld [vmem:[#allocation10 + $0x8] sm:$0xff]  ;;  %v840_v10 = vld [vmem:[#allocation10] sm:$0xff]  ;;  %270 = vmatpush.bf16.msra.mxu2 %v839_v12  ;;  %v838_v14 = vld [vmem:[#allocation8] sm:$0xff]  ;;  %vm738_vm15 = vcmask 326656   ;;  %s747_s21 = sshll.u32 %s1442_s15, 4  ;;  %s757_s17 = sshll.u32 %s1443_s16, 4  ;;  %s748_s21 = int_to_ptr.hbm [resolvable:$true] %s747_s21  ;;  %s758_s17 = int_to_ptr.hbm [resolvable:$true] %s757_s17 }
  0x26   :  { %v1290_v11 = vld [vmem:[%s1434_s7] ss:$0 sm:$0xff]  ;;  %v837_v13 = vld [vmem:[#allocation7 + $0x8] sm:$0xff]  ;;  %287 = vmatpush.bf16.msra.mxu3 %v839_v12  ;;  %v204_v24 = vld [vmem:[#allocation5] sm:$0xff] }
  0x27   :  { %195 = vmatpush.msra.mxu0 %v177_v4  ;;  %v1294_v15 = vld [vmem:[#allocation2] sm:$0xff]  ;;  %237 = vmatpush.bf16.msra.mxu1 %v837_v13  ;;  %v209_v16 = vld [vmem:[#allocation2 + $0x8] sm:$0xff]  ;;  %v303_v25 = vpack.c.bf16 %v204_v24, %v204_v24  ;;  %v843_v0 = vld [vmem:[#allocation11 + $0x8] sm:$0xff] }
  0x28   :  { %v164_v1 = vld [vmem:[%s1445_s28] sm:$0xff]  ;;  %v244_v17 = vpack.c.bf16 %v1294_v15, %v1294_v15  ;;  %v277_v18 = vpack.c.bf16 %v209_v16, %v209_v16  ;;  %v845_v62 = vld [vmem:[#allocation13 + $0x8] sm:$0xff]  ;;  %v1322_v2 = vld [vmem:[#allocation5 + $0x8] sm:$0xff] }
  0x29   :  { %168 = vperm.xlu0 %863, %v164_v1   ;;  %196 = vmatpush.msra.mxu0 %v176_v5  ;;  %v836_v26 = vld [vmem:[#allocation7] sm:$0xff]  ;;  %v842_v3 = vld [vmem:[#allocation11] sm:$0xff]  ;;  %v421_v4 = vpack.c.bf16 %v1322_v2, %v1322_v2  ;;  %v655_v13 = vld [vmem:[%s1438_s11 + $0x18] sm:$0xff] }
  0x2a   :  { %271 = vmatpush.bf16.msra.mxu2 %v838_v14  ;;  %288 = vmatpush.bf16.msra.mxu3 %v838_v14  ;;  %v1320_v63 = vld [vmem:[%s1437_s10] ss:$0 sm:$0xff]  ;;  %v654_v14 = vld [vmem:[%s1438_s11 + $0x10] sm:$0xff]  ;;  %v653_v16 = vld [vmem:[%s1438_s11 + $0x8] sm:$0xff] }
  0x2b   :  { %197 = vmatpush.msra.mxu0 %v175_v6  ;;  %238 = vmatpush.bf16.msra.mxu1 %v836_v26  ;;  %v844_v1 = vld [vmem:[#allocation13] sm:$0xff] }
  0x2d   :  { %198 = vmatpush.msra.mxu0 %v174_v7  ;;  %797 = vmatmul.msk.bf16.vlgmr.msra.gmra.mxu2 %vm227_vm0, %v244_v17  ;;  %v652_v17 = vld [vmem:[%s1438_s11] sm:$0xff] }
  0x2e   :  { %510 = vmatpush.bf16.msrb.mxu3 %v841_v9  ;;  %447 = vmatpush.bf16.msrb.mxu2 %v845_v62 }
  0x2f   :  { %199 = vmatpush.msra.mxu0 %v173_v8  ;;  %798 = vmatmul.msk.bf16.vlgmr.msra.gmra.mxu3 %vm227_vm0, %v277_v18 }
  0x30   :  { %414 = vmatpush.bf16.msrb.mxu1 %v843_v0 }
  0x31   :  { %329 = vmatpush.bf16.msrb.mxu0 %v841_v9  ;;  %358 = vrot.lane.b32.xlu0 %v1290_v11, %s1131_s9 }
  0x32   :  { %511 = vmatpush.bf16.msrb.mxu3 %v840_v10  ;;  %448 = vmatpush.bf16.msrb.mxu2 %v844_v1 }
  0x34   :  { %415 = vmatpush.bf16.msrb.mxu1 %v842_v3 }
  0x35   :  { %330 = vmatpush.bf16.msrb.mxu0 %v840_v10 }
  0x36   :  { %697 = vmatpush.msra.mxu3 %v655_v13 }
  0x38   :  { %698 = vmatpush.msra.mxu3 %v654_v14 }
  0x3a   :  { %699 = vmatpush.msra.mxu3 %v653_v16 }
  0x3c   :  { %700 = vmatpush.msra.mxu3 %v652_v17 }
  0x3d   :  { %826 = vmatmul.msk.bf16.vlgmr.msrb.gmra.mxu2 %vm227_vm0, %v421_v4 }
  0x9b   :  { %v169_v21 = vpop.permute.xlu0 %168 }
  0x9c   :  { %vm170_vm2 = vcmp.eq.s32.totalorder %v166_v20, %v169_v21 }
  0x9d   :  { %v778_v23 = vsel %vm170_vm2, 1.0, %v1132_v22 }
  0x9e   :  { %779 = vmatmul.msk.f32.vlgmr.msra.gmra.mxu0 %vm180_vm1, %v778_v23 }
  0x9f   :  { %572 = vmatpush.bf16.msra.mxu0 %v843_v0 }
  0xa3   :  { %v1306_v31 = vpop.permute.xlu0 %358  ;;  %573 = vmatpush.bf16.msra.mxu0 %v842_v3 }
  0xa6   :  { %807 = vmatmul.msk.bf16.vlgmr.msrb.gmra.mxu0 %vm227_vm0, %v303_v25 }
  0xb0   :  { %v273_v27 = vpop.f32.mrf.mxu2 }
  0xb2   :  { %v290_v35 = vpop.f32.mrf.mxu3 }
  0xb8   :  { %v275_v28 = vpop.f32.mrf.mxu2 }
  0xba   :  { %v292_v36 = vpop.f32.mrf.mxu3 }
  0xc0   :  { %v450_v19 = vpop.f32.mrf.mxu2 }
  0xc8   :  { %v452_v22 = vpop.f32.mrf.mxu2 }
 0x11b   :  { %v1301_v29 = vpop.f32.mrf.mxu0 }
 0x11c   :  { %v210_v30 = vpack.c.bf16 %v1301_v29, %v1301_v29 }
 0x11e   :  { %788 = vmatmul.msk.bf16.vlgmr.msra.gmra.mxu1 %vm227_vm0, %v210_v30 }
 0x11f   :  { %592 = vmatpush.bf16.msra.mxu1 %v845_v62 }
 0x123   :  { %v332_v32 = vpop.f32.mrf.mxu0  ;;  %593 = vmatpush.bf16.msra.mxu1 %v844_v1 }
 0x124   :  { %v361_v33 = vadd.f32 %v1306_v31, %v332_v32 }
 0x126   :  { %363 = vrot.lane.b32.xlu1 %v361_v33, %s1123_s20 }
 0x12b   :  { %v334_v34 = vpop.f32.mrf.mxu0 }
 0x198   :  { %v364_v54 = vpop.permute.xlu1 %363 }
 0x19b   :  { %v240_v37 = vpop.f32.mrf.mxu1 }
 0x19c   :  { %v302_v38 = vadd.f32 %v273_v27, %v240_v37  ;;  %v1310_v39 = vadd.f32 %v290_v35, %v240_v37 }
 0x19e   :  { %v336_v40 = vadd.f32 %v332_v32, %v302_v38  ;;  %v357_v58 = vadd.f32 %v1290_v11, %v302_v38  ;;  %v538_v4 = vadd.f32 %v1290_v11, %v1310_v39 }
 0x1a0   :  { %v337_v41 = vadd.f32 %v1290_v11, %v336_v40 }
 0x1a2   :  { %v808_v42 = vmul.f32 -1.442695, %v337_v41 }
 0x1a3   :  { %v242_v43 = vpop.f32.mrf.mxu1 }
 0x1a4   :  { %867 = vpow2.f32 %v808_v42 }
 0x1aa   :  { %v868_v44 = vpop.eup %867 }
 0x1ab   :  { %v341_v45 = vadd.f32 1.0, %v868_v44 }
 0x1ad   :  { %869 = vrcp.f32 %v341_v45  ;;  %v353_v49 = vand.u32 2147483648, %v341_v45  ;;  %v351_v51 = vand.u32 2147483647, %v341_v45  ;;  %vm347_vm4 = vweird.f32 %v341_v45 }
 0x1af   :  { %v354_v53 = vor.u32 1.1754944e-38, %v353_v49  ;;  %vm352_vm6 = vcmp.eq.f32.partialorder %v351_v51, 8.507059e+37 }
 0x1b3   :  { %v870_v46 = vpop.eup %869 }
 0x1b4   :  { %v343_v47 = vmul.f32 %v870_v46, %v341_v45  ;;  %vm348_vm3 = vweird.f32 %v870_v46 }
 0x1b5   :  { %vm349_vm5 = vmor %vm347_vm4, %vm348_vm3 }
 0x1b6   :  { %v344_v48 = vsub.f32 1.0, %v343_v47 }
 0x1b8   :  { %v345_v50 = vmul.f32 %v870_v46, %v344_v48 }
 0x1ba   :  { %v346_v52 = vadd.f32 %v870_v46, %v345_v50 }
 0x1bc   :  { %v350_v55 = vsel %vm349_vm5, %v870_v46, %v346_v52 }
 0x1bd   :  { %v355_v56 = vsel %vm352_vm6, %v354_v53, %v350_v55 }
 0x1be   :  { %v366_v57 = vmul.f32 %v364_v54, %v355_v56  ;;  %v373_v6 = vsub.f32 1.0, %v355_v56 }
 0x1c0   :  { %368 = vrot.lane.b32.xlu1 %v366_v57, %s1123_s20 }
 0x1c8   :  { %476 = vrot.lane.b32.xlu1 %v1320_v63, %s1131_s9 }
 0x232   :  { %v369_v59 = vpop.permute.xlu1 %368 }
 0x233   :  { %v371_v60 = vadd.f32 %v369_v59, %v357_v58 }
 0x235   :  { %871 = vtanh.f32 %v371_v60 }
 0x23a   :  { %v1346_v18 = vpop.permute.xlu1 %476 }
 0x23b   :  { %v872_v61 = vpop.eup %871  ;;  %v479_v20 = vadd.f32 %v1346_v18, %v450_v19 }
 0x23c   :  { %375 = vrot.lane.b32.xlu2 %v872_v61, %s1131_s9 }
 0x244   :  { %380 = vrot.lane.b32.xlu2 %v204_v24, %s1133_s1 }
 0x24c   :  { %481 = vrot.lane.b32.xlu2 %v479_v20, %s1123_s20 }
 0x296   :  { %v376_v5 = vpop.permute.xlu2 %375 }
 0x297   :  { %v378_v8 = vmul.f32 %v376_v5, %v373_v6 }
 0x29e   :  { %v381_v7 = vpop.permute.xlu2 %380 }
 0x29f   :  { %v383_v9 = vmul.f32 %v381_v7, %v355_v56 }
 0x2a1   :  { %v1329_v10 = vadd.f32 %v383_v9, %v378_v8 }
 0x2a3   :  { %v385_v12 = vpack.c.bf16 %v1329_v10, %v1329_v10 }
 0x2a5   :  { %391 = vrot.lane.b32.xlu0 %v385_v12, %s1131_s9 }
 0x2a6   :  { %v482_v43 = vpop.permute.xlu2 %481 }
 0x317   :  { %v392_v21 = vpop.permute.xlu0 %391 }
 0x318   :  { %817 = vmatmul.msk.bf16.vlgmr.msrb.gmra.mxu1 %vm227_vm0, %v392_v21  ;;  %828 = vmatmul.msk.bf16.vlgmr.msrb.gmra.mxu3 %vm227_vm0, %v392_v21 }
 0x328   :  { %834 = vmatmul.msk.f32.vlgmr.msra.gmra.mxu3 %vm227_vm0, %v1301_v29 }
 0x395   :  { %v417_v23 = vpop.f32.mrf.mxu1 }
 0x396   :  { %v454_v24 = vadd.f32 %v450_v19, %v417_v23  ;;  %v475_v0 = vadd.f32 %v1320_v63, %v417_v23  ;;  %v659_v23 = vld [vmem:[%s1439_s12 + $0x18] sm:$0xff] }
 0x397   :  { %674 = vmatpush.msra.mxu2 %v659_v23 }
 0x398   :  { %v455_v25 = vadd.f32 %v1320_v63, %v454_v24  ;;  %v658_v24 = vld [vmem:[%s1439_s12 + $0x10] sm:$0xff] }
 0x399   :  { %675 = vmatpush.msra.mxu2 %v658_v24 }
 0x39a   :  { %v827_v26 = vmul.f32 -1.442695, %v455_v25  ;;  %v656_v25 = vld [vmem:[%s1439_s12] sm:$0xff] }
 0x39b   :  { %v513_v27 = vpop.f32.mrf.mxu3 }
 0x39c   :  { %873 = vpow2.f32 %v827_v26  ;;  %v539_v28 = vadd.f32 %v513_v27, %v1306_v31  ;;  %v517_v46 = vadd.f32 %v513_v27, %v1310_v39  ;;  %v708_v26 = vld [vmem:[%s1440_s13 + $0x18] sm:$0xff]  ;;  %v707_v27 = vld [vmem:[%s1440_s13 + $0x10] sm:$0xff] }
 0x39d   :  { %v419_v30 = vpop.f32.mrf.mxu1 }
 0x39e   :  { %541 = vrot.lane.b32.xlu0 %v539_v28, %s1123_s20  ;;  %v518_v47 = vadd.f32 %v1290_v11, %v517_v46  ;;  %v706_v28 = vld [vmem:[%s1440_s13 + $0x8] sm:$0xff]  ;;  %v705_v30 = vld [vmem:[%s1440_s13] sm:$0xff] }
 0x3a0   :  { %v829_v48 = vmul.f32 -1.442695, %v518_v47 }
 0x3a2   :  { %v874_v32 = vpop.eup %873 }
 0x3a3   :  { %v459_v33 = vadd.f32 1.0, %v874_v32  ;;  %v515_v34 = vpop.f32.mrf.mxu3 }
 0x3a5   :  { %875 = vrcp.f32 %v459_v33  ;;  %v471_v29 = vand.u32 2147483648, %v459_v33  ;;  %v469_v40 = vand.u32 2147483647, %v459_v33  ;;  %vm465_vm8 = vweird.f32 %v459_v33 }
 0x3a6   :  { %877 = vpow2.f32 %v829_v48 }
 0x3a7   :  { %v472_v42 = vor.u32 1.1754944e-38, %v471_v29  ;;  %vm470_vm10 = vcmp.eq.f32.partialorder %v469_v40, 8.507059e+37 }
 0x3ab   :  { %v876_v35 = vpop.eup %875 }
 0x3ac   :  { %v461_v36 = vmul.f32 %v876_v35, %v459_v33  ;;  %vm466_vm7 = vweird.f32 %v876_v35  ;;  %v878_v49 = vpop.eup %877 }
 0x3ad   :  { %vm467_vm9 = vmor %vm465_vm8, %vm466_vm7  ;;  %v522_v50 = vadd.f32 1.0, %v878_v49 }
 0x3ae   :  { %v462_v37 = vsub.f32 1.0, %v461_v36 }
 0x3af   :  { %879 = vrcp.f32 %v522_v50  ;;  %v534_v56 = vand.u32 2147483648, %v522_v50  ;;  %vm528_vm12 = vweird.f32 %v522_v50  ;;  %v532_v57 = vand.u32 2147483647, %v522_v50 }
 0x3b0   :  { %v463_v38 = vmul.f32 %v876_v35, %v462_v37 }
 0x3b1   :  { %v535_v59 = vor.u32 1.1754944e-38, %v534_v56  ;;  %vm533_vm14 = vcmp.eq.f32.partialorder %v532_v57, 8.507059e+37 }
 0x3b2   :  { %v464_v41 = vadd.f32 %v876_v35, %v463_v38  ;;  %v702_v38 = vpop.f32.mrf.mxu3 }
 0x3b4   :  { %v468_v31 = vsel %vm467_vm9, %v876_v35, %v464_v41  ;;  %v866_v41 = vld [vmem:[%s1441_s14] ss:$0 sm:$0xff]  ;;  %s1134_s14 = smov [#allocation14]  }
 0x3b5   :  { %v473_v44 = vsel %vm470_vm10, %v472_v42, %v468_v31  ;;  %v880_v51 = vpop.eup %879  ;;  %s745_s29 = sshll.u32 %s1134_s14, 4  ;;  %s746_s29 = int_to_ptr.vmem [resolvable:$true] %s745_s29 }
 0x3b6   :  { %v484_v45 = vmul.f32 %v482_v43, %v473_v44  ;;  %v524_v52 = vmul.f32 %v880_v51, %v522_v50  ;;  %vm529_vm11 = vweird.f32 %v880_v51  ;;  %v491_v9 = vsub.f32 1.0, %v473_v44 }
 0x3b7   :  { %vm530_vm13 = vmor %vm528_vm12, %vm529_vm11 }
 0x3b8   :  { %486 = vrot.lane.b32.xlu1 %v484_v45, %s1123_s20  ;;  %v525_v53 = vsub.f32 1.0, %v524_v52 }
 0x3ba   :  { %v526_v54 = vmul.f32 %v880_v51, %v525_v53 }
 0x3bc   :  { %v527_v55 = vadd.f32 %v880_v51, %v526_v54 }
 0x3be   :  { %v531_v58 = vsel %vm530_vm13, %v880_v51, %v527_v55 }
 0x3bf   :  { %v536_v61 = vsel %vm533_vm14, %v535_v59, %v531_v58 }
 0x3c0   :  { %498 = vrot.lane.b32.xlu1 %v1322_v2, %s1133_s1  ;;  %v551_v19 = vsub.f32 1.0, %v536_v61  ;;  %v557_v39 = vmul.f32 %v536_v61, %v1329_v10  ;;  %v657_v10 = vld [vmem:[%s1439_s12 + $0x8] sm:$0xff] }
 0x3c1   :  { %676 = vmatpush.msra.mxu2 %v657_v10 }
 0x3c3   :  { %677 = vmatpush.msra.mxu2 %v656_v25 }
 0x3c5   :  { %724 = vmatpush.msrb.mxu2 %v708_v26 }
 0x3c7   :  { %725 = vmatpush.msrb.mxu2 %v707_v27 }
 0x3c9   :  { %726 = vmatpush.msrb.mxu2 %v706_v28 }
 0x3cb   :  { %727 = vmatpush.msrb.mxu2 %v705_v30 }
 0x410   :  { %v542_v60 = vpop.permute.xlu0 %541 }
 0x411   :  { %v544_v62 = vmul.f32 %v542_v60, %v536_v61 }
 0x413   :  { %546 = vrot.lane.b32.xlu2 %v544_v62, %s1123_s20 }
 0x42a   :  { %v487_v1 = vpop.permute.xlu1 %486 }
 0x42b   :  { %v489_v2 = vadd.f32 %v487_v1, %v475_v0 }
 0x42d   :  { %881 = vtanh.f32 %v489_v2 }
 0x432   :  { %v499_v8 = vpop.permute.xlu1 %498 }
 0x433   :  { %v882_v3 = vpop.eup %881  ;;  %v501_v13 = vmul.f32 %v499_v8, %v473_v44 }
 0x434   :  { %493 = vrot.lane.b32.xlu0 %v882_v3, %s1131_s9 }
 0x46d   :  { %v547_v5 = vpop.permute.xlu2 %546 }
 0x46e   :  { %v549_v6 = vadd.f32 %v547_v5, %v538_v4 }
 0x470   :  { %883 = vtanh.f32 %v549_v6 }
 0x476   :  { %v884_v7 = vpop.eup %883 }
 0x477   :  { %553 = vrot.lane.b32.xlu2 %v884_v7, %s1131_s9 }
 0x4a6   :  { %v494_v12 = vpop.permute.xlu0 %493 }
 0x4a7   :  { %v496_v14 = vmul.f32 %v494_v12, %v491_v9 }
 0x4a9   :  { %v1368_v16 = vadd.f32 %v501_v13, %v496_v14 }
 0x4ab   :  { %v579_v17 = vpack.c.bf16 %v1368_v16, %v1368_v16 }
 0x4ad   :  { %581 = vrot.lane.b32.xlu0 %v579_v17, %s1131_s9 }
 0x4d1   :  { %v554_v11 = vpop.permute.xlu2 %553 }
 0x4d2   :  { %v556_v20 = vmul.f32 %v554_v11, %v551_v19 }
 0x4d4   :  { %v558_v21 = vadd.f32 %v557_v39, %v556_v20 }
 0x4d6   :  { %642 = vrot.lane.b32.xlu2 %v558_v21, %s1131_s9  ;;  %v559_v22 = vpack.c.bf16 %v558_v21, %v558_v21 }
 0x4d8   :  { %561 = vrot.lane.b32.xlu1 %v559_v22, %s1131_s9 }
 0x51f   :  { %v582_v32 = vpop.permute.xlu0 %581 }
 0x520   :  { %831 = vmatmul.msk.bf16.vlgmr.msra.gmra.mxu1 %vm227_vm0, %v582_v32 }
 0x530   :  { %v643_v33 = vpop.permute.xlu2 %642 }
 0x531   :  { %645 = vst.msk [vmem:[#allocation15] sm:$0xff] %vm227_vm0, %v643_v33  ;;  %833 = vmatmul.msk.f32.vlgmr.msra.gmra.mxu2 %vm227_vm0, %v643_v33 }
 0x539   :  { %835 = vmatmul.msk.f32.vlgmr.msrb.gmra.mxu2 %vm227_vm0, %v1294_v15 }
 0x54a   :  { %v562_v34 = vpop.permute.xlu1 %561 }
 0x54b   :  { %830 = vmatmul.msk.bf16.vlgmr.msra.gmra.mxu0 %vm227_vm0, %v562_v34 }
 0x59d   :  { %v595_v35 = vpop.f32.mrf.mxu1 }
 0x59e   :  { %v621_v36 = vadd.f32 %v595_v35, %v1346_v18 }
 0x5a0   :  { %623 = vrot.lane.b32.xlu0 %v621_v36, %s1123_s20 }
 0x5a5   :  { %v597_v37 = vpop.f32.mrf.mxu1 }
 0x5b4   :  { %v679_v29 = vpop.f32.mrf.mxu2 }
 0x5b5   :  { %v703_v40 = vadd.f32 %v702_v38, %v679_v29 }
 0x5bc   :  { %v729_v42 = vpop.f32.mrf.mxu2 }
 0x5bd   :  { %v732_v43 = vadd.f32 %v729_v42, %v703_v40 }
 0x5bf   :  { %v737_v15 = vadd.f32 %v866_v41, %v732_v43 }
 0x5c1   :  { %739 = vst.msk [vmem:[#allocation14] sm:$0xff] %vm738_vm15, %v737_v15 }
 0x5c2   :  { %750 = dma.vmem_to_hbm [thread:$0]  %s746_s29, 128, %s748_s21, [#allocation4]  }
 0x5c8   :  { %v575_v31 = vpop.f32.mrf.mxu0 }
 0x5c9   :  { %v599_v45 = vadd.f32 %v595_v35, %v575_v31  ;;  %v620_v61 = vadd.f32 %v1320_v63, %v575_v31 }
 0x5cb   :  { %v600_v18 = vadd.f32 %v1320_v63, %v599_v45 }
 0x5cd   :  { %v832_v46 = vmul.f32 -1.442695, %v600_v18 }
 0x5cf   :  { %885 = vpow2.f32 %v832_v46 }
 0x5d0   :  { %v577_v44 = vpop.f32.mrf.mxu0 }
 0x5d5   :  { %v886_v47 = vpop.eup %885 }
 0x5d6   :  { %v604_v48 = vadd.f32 1.0, %v886_v47 }
 0x5d8   :  { %887 = vrcp.f32 %v604_v48  ;;  %v616_v54 = vand.u32 2147483648, %v604_v48  ;;  %vm610_vm2 = vweird.f32 %v604_v48  ;;  %v614_v55 = vand.u32 2147483647, %v604_v48 }
 0x5da   :  { %v617_v57 = vor.u32 1.1754944e-38, %v616_v54  ;;  %vm615_vm4 = vcmp.eq.f32.partialorder %v614_v55, 8.507059e+37 }
 0x5de   :  { %v888_v49 = vpop.eup %887 }
 0x5df   :  { %v606_v50 = vmul.f32 %v888_v49, %v604_v48  ;;  %vm611_vm1 = vweird.f32 %v888_v49 }
 0x5e0   :  { %vm612_vm3 = vmor %vm610_vm2, %vm611_vm1 }
 0x5e1   :  { %v607_v51 = vsub.f32 1.0, %v606_v50 }
 0x5e3   :  { %v608_v52 = vmul.f32 %v888_v49, %v607_v51 }
 0x5e5   :  { %v609_v53 = vadd.f32 %v888_v49, %v608_v52 }
 0x5e7   :  { %v613_v56 = vsel %vm612_vm3, %v888_v49, %v609_v53 }
 0x5e8   :  { %v618_v59 = vsel %vm615_vm4, %v617_v57, %v613_v56 }
 0x5e9   :  { %v633_v2 = vsub.f32 1.0, %v618_v59  ;;  %v639_v4 = vmul.f32 %v618_v59, %v1368_v16 }
 0x612   :  { %v624_v58 = vpop.permute.xlu0 %623 }
 0x613   :  { %v626_v60 = vmul.f32 %v624_v58, %v618_v59 }
 0x615   :  { %628 = vrot.lane.b32.xlu1 %v626_v60, %s1123_s20  ;;  %s1135_s20 = smov [#allocation15]  }
 0x616   :  { %s755_s2 = sshll.u32 %s1135_s20, 4  ;;  %s756_s2 = int_to_ptr.vmem [resolvable:$true] %s755_s2 }
 0x687   :  { %v629_v62 = vpop.permute.xlu1 %628 }
 0x688   :  { %v631_v0 = vadd.f32 %v629_v62, %v620_v61 }
 0x68a   :  { %889 = vtanh.f32 %v631_v0 }
 0x690   :  { %v890_v1 = vpop.eup %889 }
 0x691   :  { %635 = vrot.lane.b32.xlu2 %v890_v1, %s1131_s9 }
 0x6eb   :  { %v636_v3 = vpop.permute.xlu2 %635 }
 0x6ec   :  { %v638_v63 = vmul.f32 %v636_v3, %v633_v2 }
 0x6ee   :  { %v640_v5 = vadd.f32 %v639_v4, %v638_v63 }
 0x6f0   :  { %647 = vrot.lane.b32.xlu0 %v640_v5, %s1131_s9 }
 0x762   :  { %v648_v6 = vpop.permute.xlu0 %647 }
 0x763   :  { %651 = vst.msk [vmem:[#allocation15 + $0x8] sm:$0xff] %vm227_vm0, %v648_v6 }
 0x764   :  { %763 = dma.vmem_to_hbm [thread:$0]  %s756_s2, 256, %s758_s17, [#allocation16], %s1120_s26, %s1120_s26, %s1121_s27  }
 0x765   :  { %1115 = dma.done.wait [#allocation4], 128  }
 0x766   :  { %1116 = vsyncadd [#allocation4], 4294967168 }
 0x767   :  { %1117 = dma.done.wait [#allocation16], 256  }
 0x768   :  { %1118 = vsyncadd [#allocation16], 4294967040 }
 0x769   :  { %772 = vsyncpa [#allocation3], 1 }
 0x76a   :  { %773 = vsyncpa [#allocation6], 1 }
 0x76b   :  { %774 = vsyncpa [#allocation9], 1 }
 0x76c   :  { %775 = vsyncpa [#allocation12], 1 }
 0x76d   :  { %776 = vsyncpa [#allocation4], 1 }
 0x76e   :  { %777 = vsyncpa [#allocation16], 1 }

</bundles_post_ra>
